<compile_context>
chip_gen: v7x
topology: tpu7x:2x2x1
jax: 0.10.0
libtpu: 0.0.40
codegen_flags: <defaults>
</compile_context>

<pallas_src>
import functools

import jax
import jax.numpy as jnp
from jax.experimental import pallas as pl
from jax.experimental.pallas import tpu as pltpu

LN_EPS = 1e-5  # torch.nn.LayerNorm default


# ------------------------- in-kernel helper math ----------------------------

def _mm(x_b16, w_b16):
    """bf16 MXU matmul with f32 accumulation."""
    return jnp.dot(x_b16, w_b16, preferred_element_type=jnp.float32)


def _layer_norm(x, g, b):
    mu = jnp.mean(x, axis=-1, keepdims=True)
    var = jnp.mean((x - mu) ** 2, axis=-1, keepdims=True)
    return (x - mu) * jax.lax.rsqrt(var + LN_EPS) * g + b


def _mha(q_src, kv_src, wq_ref, wk_ref, wv_ref, wo_ref, bo_ref):
    """diffusers CrossAttention (bias-free q/k/v, biased to_out, dropout=0).

    q_src: (Sq, Dq) bf16 (already normalised + cast once by the caller).
    kv_src: (Sk, Dkv) bf16.
    Weights are head-stacked: wq/wk/wv (H, D_in, dh), wo (H, dh, D_out), all in
    VMEM.  The head loop uses only 2-D matmuls, dynamic leading-dim ref reads
    and a running (Sq, D_out) f32 accumulator.
    """
    heads = wq_ref.shape[0]
    dh = wq_ref.shape[2]
    d_out = wo_ref.shape[2]
    sq = q_src.shape[0]
    scale = float(dh) ** -0.5

    def head_body(h, acc):
        qh = (_mm(q_src, wq_ref[h]) * scale).astype(jnp.bfloat16)    # (Sq, dh)
        kh = _mm(kv_src, wk_ref[h]).astype(jnp.bfloat16)             # (Sk, dh)
        vh = _mm(kv_src, wv_ref[h]).astype(jnp.bfloat16)             # (Sk, dh)
        # QK^T without an explicit transpose (contract the dh dims).
        s = jax.lax.dot_general(qh, kh, (((1,), (1,)), ((), ())),
                                preferred_element_type=jnp.float32)  # (Sq, Sk)
        m = jnp.max(s, axis=-1, keepdims=True)
        p = jnp.exp(s - m)                                           # f32 VPU/EUP
        l = jnp.sum(p, axis=-1, keepdims=True)
        o = _mm(p.astype(jnp.bfloat16), vh)                          # (Sq, dh) f32
        o = (o * pl.reciprocal(l, approx=True)).astype(jnp.bfloat16)
        # merge-heads + to_out fused:  concat_h(o_h) @ Wo == sum_h o_h @ Wo[h]
        return acc + _mm(o, wo_ref[h])                               # (Sq, D_out)

    acc0 = jnp.zeros((sq, d_out), jnp.float32)
    out = jax.lax.fori_loop(0, heads, head_body, acc0)
    return out + bo_ref[...]


# ------------------------------ pass-1 kernel -------------------------------

def _self_attn_kernel(hq_ref, hf_ref, n1g, n1b, wq, wk, wv, wo, bo, o_ref):
    """h1[tile] = h[tile] + attn1(norm1(h))[tile]  (K/V from the full sequence)."""
    hq = hq_ref[0]                                                  # (TQ, D) f32
    hf = hf_ref[0]                                                  # (S,  D) f32
    nq = _layer_norm(hq, n1g[...], n1b[...]).astype(jnp.bfloat16)   # cast once
    nf = _layer_norm(hf, n1g[...], n1b[...]).astype(jnp.bfloat16)   # K/V source
    o_ref[0] = hq + _mha(nq, nf, wq, wk, wv, wo, bo)


# ------------------------------ pass-2 kernel -------------------------------

def _sketch_cross_ff_kernel(hq_ref, hf_ref, sk_ref, enc_ref,
                            spw, spb, sng, snb,
                            sa_wq, sa_wk, sa_wv, sa_wo, sa_bo,
                            cvw, cvb,
                            n2g, n2b,
                            a2_wq, a2_wk, a2_wv, a2_wo, a2_bo,
                            n3g, n3b,
                            ff_wv, ff_bv, ff_wg, ff_bg, ff_w2, ff_b2,
                            o_ref, *, sketch_scale):
    hq = hq_ref[0]                                       # (TQ, D)   f32  (h1 tile)
    hf = hf_ref[0]                                       # (S,  D)   f32  (full h1)
    sk = sk_ref[0].astype(jnp.bfloat16)                  # (Ssk, 1024)    cast once
    enc = enc_ref[0].astype(jnp.bfloat16)                # (Se, Dc)       cast once

    # --- sketch branch ---
    sk_p = _mm(sk, spw[...]) + spb[...]                  # sketch_proj -> (Ssk, D)
    # sketch_norm(cat([h1, sk_p])) is row-wise with shared params: normalise the
    # two segments separately; concatenate only the bf16 K/V source.
    nq = _layer_norm(hq, sng[...], snb[...]).astype(jnp.bfloat16)
    nk_h = _layer_norm(hf, sng[...], snb[...]).astype(jnp.bfloat16)
    nk_s = _layer_norm(sk_p, sng[...], snb[...]).astype(jnp.bfloat16)
    kv = jnp.concatenate([nk_h, nk_s], axis=0)           # (S + Ssk, D) bf16
    # queries = first S rows only (softmax rows are independent -> bit-identical
    # to attending with all S+Ssk rows and cropping).
    sk_attn = _mha(nq, kv, sa_wq, sa_wk, sa_wv, sa_wo, sa_bo)
    # Conv1d(D, D, 1) on the (B, D, S)-permuted tensor == per-token linear.
    conv = _mm(sk_attn.astype(jnp.bfloat16), cvw[...]) + cvb[...]
    hq = hq + sketch_scale * conv

    # --- attn2: cross-attention to encoder hidden states ---
    n2 = _layer_norm(hq, n2g[...], n2b[...]).astype(jnp.bfloat16)
    hq = hq + _mha(n2, enc, a2_wq, a2_wk, a2_wv, a2_wo, a2_bo)

    # --- norm3 + GEGLU feed-forward (value/gate projections kept separate) ---
    n3 = _layer_norm(hq, n3g[...], n3b[...]).astype(jnp.bfloat16)
    val = _mm(n3, ff_wv[...]) + ff_bv[...]               # (TQ, 4D)
    gate = _mm(n3, ff_wg[...]) + ff_bg[...]              # (TQ, 4D)
    # TODO(synk): exact erf GELU for bit-parity with torch F.gelu; the tanh form
    # keeps the transcendental on the EUP slot.
    act = (val * jax.nn.gelu(gate, approximate=True)).astype(jnp.bfloat16)
    hq = hq + _mm(act, ff_w2[...]) + ff_b2[...]

    o_ref[0] = hq


# ------------------------------- model glue ---------------------------------

def _choose_q_tile(s, pref=256):
    if s <= pref:
        return s
    for t in (pref, 128, 64, 32, 16, 8):
        if t <= s and s % t == 0:
            return t
    return s


def _const_spec(w):
    """Full-array weight block, constant index -> resident across the grid."""
    zeros = (0,) * w.ndim
    return pl.BlockSpec(w.shape, lambda b, q: zeros)


def attn_module_forward(hidden_states, sketch_state, encoder_hidden_states,
                        params, sketch_scale=1.0, q_tile=256):
    p = params
    B, S, D = hidden_states.shape
    Ssk, Dsk = sketch_state.shape[1:]
    Se, Dc = encoder_hidden_states.shape[1:]
    TQ = _choose_q_tile(S, q_tile)
    NQ = S // TQ

    cparams = pltpu.CompilerParams(
        dimension_semantics=("parallel", "parallel"),
        # Re-derive per generation; kept under v7x's 64 MiB physical VMEM.
        vmem_limit_bytes=48 * 1024 * 1024,
    )

    q_spec = pl.BlockSpec((1, TQ, D), lambda b, q: (b, q, 0))
    full_spec = pl.BlockSpec((1, S, D), lambda b, q: (b, 0, 0))

    # -------- pass 1: h1 = h + attn1(norm1(h)) --------
    w1 = (p["norm1_g"], p["norm1_b"],
          p["attn1"]["wq"], p["attn1"]["wk"], p["attn1"]["wv"],
          p["attn1"]["wo"], p["attn1"]["bo"])
    h1 = pl.pallas_call(
        _self_attn_kernel,
        out_shape=jax.ShapeDtypeStruct((B, S, D), jnp.float32),
        grid=(B, NQ),
        in_specs=[q_spec, full_spec] + [_const_spec(w) for w in w1],
        out_specs=q_spec,
        compiler_params=cparams,
    )(hidden_states, hidden_states, *w1)

    # -------- pass 2: sketch branch + cross-attn + GEGLU FF --------
    w2 = (p["sketch_proj_w"], p["sketch_proj_b"],
          p["sketch_norm_g"], p["sketch_norm_b"],
          p["sketch_attn"]["wq"], p["sketch_attn"]["wk"], p["sketch_attn"]["wv"],
          p["sketch_attn"]["wo"], p["sketch_attn"]["bo"],
          p["sketch_conv_w"], p["sketch_conv_b"],
          p["norm2_g"], p["norm2_b"],
          p["attn2"]["wq"], p["attn2"]["wk"], p["attn2"]["wv"],
          p["attn2"]["wo"], p["attn2"]["bo"],
          p["norm3_g"], p["norm3_b"],
          p["ff_w1v"], p["ff_b1v"], p["ff_w1g"], p["ff_b1g"],
          p["ff_w2"], p["ff_b2"])
    kern2 = functools.partial(_sketch_cross_ff_kernel,
                              sketch_scale=float(sketch_scale))
    out = pl.pallas_call(
        kern2,
        out_shape=jax.ShapeDtypeStruct((B, S, D), jnp.float32),
        grid=(B, NQ),
        in_specs=[q_spec, full_spec,
                  pl.BlockSpec((1, Ssk, Dsk), lambda b, q: (b, 0, 0)),
                  pl.BlockSpec((1, Se, Dc), lambda b, q: (b, 0, 0))]
                 + [_const_spec(w) for w in w2],
        out_specs=q_spec,
        compiler_params=cparams,
    )(h1, h1, sketch_state, encoder_hidden_states, *w2)
    return out


# ------------------------------ parameter init ------------------------------
# Weights are stored in bf16 (MXU operands); biases / LN params stay f32.  This
# is a deliberate numerics deviation from the fp32 torch reference.

def _w(key, shape, scale=0.02):
    return (scale * jax.random.normal(key, shape, jnp.float32)).astype(jnp.bfloat16)


def _b(key, dout, scale=0.02):
    return scale * jax.random.normal(key, (1, dout), jnp.float32)


def _attn_params(key, q_dim, kv_dim, heads, dh):
    kq, kk, kv, ko, kb = jax.random.split(key, 5)
    return {
        # torch to_q.weight is (inner, q_dim);  wq[h] == to_q.weight.T[:, h*dh:(h+1)*dh]
        "wq": _w(kq, (heads, q_dim, dh)),
        "wk": _w(kk, (heads, kv_dim, dh)),
        "wv": _w(kv, (heads, kv_dim, dh)),
        # torch to_out[0].weight is (q_dim, inner); wo[h] == weight.T[h*dh:(h+1)*dh, :]
        "wo": _w(ko, (heads, dh, q_dim)),
        "bo": _b(kb, q_dim),
    }


def init_params(key, D, heads, cross_dim, sketch_in=1024):
    dh = D // heads
    ks = jax.random.split(key, 13)
    ones = jnp.ones((1, D), jnp.float32)
    zeros = jnp.zeros((1, D), jnp.float32)
    return {
        "norm1_g": ones, "norm1_b": zeros,
        "norm2_g": ones, "norm2_b": zeros,
        "norm3_g": ones, "norm3_b": zeros,
        "attn1": _attn_params(ks[0], D, D, heads, dh),
        "attn2": _attn_params(ks[1], D, cross_dim, heads, dh),
        "sketch_proj_w": _w(ks[2], (sketch_in, D)),
        "sketch_proj_b": _b(ks[3], D),
        "sketch_norm_g": ones, "sketch_norm_b": zeros,
        "sketch_attn": _attn_params(ks[4], D, D, heads, dh),
        # Conv1d(D, D, 1): torch weight (D_out, D_in, 1) -> stored as (D_in, D_out)
        "sketch_conv_w": _w(ks[5], (D, D)),
        "sketch_conv_b": _b(ks[6], D),
        # GEGLU proj split: value half | gate half of the (D, 8D) torch weight.T
        "ff_w1v": _w(ks[7], (D, 4 * D)),
        "ff_b1v": _b(ks[8], 4 * D),
        "ff_w1g": _w(ks[9], (D, 4 * D)),
        "ff_b1g": _b(ks[10], 4 * D),
        "ff_w2": _w(ks[11], (4 * D, D)),
        "ff_b2": _b(ks[12], D),
    }


# ----------------------------------- main ------------------------------------

if __name__ == "__main__":
    B, S, D, H = 2, 16, 32, 4          # base_dim=32, heads=4, dim_head=8
    SSK, SE, CROSS = 8, 8, 64          # sketch tokens, encoder tokens, encoder dim
    key = jax.random.PRNGKey(0)
    k_h, k_s, k_e, k_p = jax.random.split(key, 4)

    hidden_states = jax.random.normal(k_h, (B, S, D), jnp.float32)
    sketch_state = jax.random.normal(k_s, (B, SSK, 1024), jnp.float32)  # CLIP feats
    encoder_hidden_states = jax.random.normal(k_e, (B, SE, CROSS), jnp.float32)
    params = init_params(k_p, D, H, CROSS)

    out = attn_module_forward(hidden_states, sketch_state, encoder_hidden_states,
                              params, sketch_scale=1.0)
    out = jax.block_until_ready(out)
    assert out.shape == (B, S, D), out.shape
    assert bool(jnp.all(jnp.isfinite(out)))
    print("KERNEL_OK")
</pallas_src>

<mosaic_0001>
module attributes {stable_mosaic.version = 11 : i64} {
  func.func @_self_attn_kernel(%arg0: i32, %arg1: i32, %arg2: memref<1x16x32xf32, #tpu.memory_space<vmem>>, %arg3: memref<1x16x32xf32, #tpu.memory_space<vmem>>, %arg4: memref<1x32xf32, #tpu.memory_space<vmem>>, %arg5: memref<1x32xf32, #tpu.memory_space<vmem>>, %arg6: memref<4x32x8xbf16, #tpu.memory_space<vmem>>, %arg7: memref<4x32x8xbf16, #tpu.memory_space<vmem>>, %arg8: memref<4x32x8xbf16, #tpu.memory_space<vmem>>, %arg9: memref<4x8x32xbf16, #tpu.memory_space<vmem>>, %arg10: memref<1x32xf32, #tpu.memory_space<vmem>>, %arg11: memref<1x16x32xf32, #tpu.memory_space<vmem>>) attributes {dimension_semantics = [#tpu.dimension_semantics<parallel>, #tpu.dimension_semantics<parallel>], iteration_bounds = array<i64: 2, 1>, scalar_prefetch = 0 : i64, scratch_operands = 0 : i64, tpu.core_type = #tpu.core_type<tc>, window_params = [{transform_indices = @transform_0, window_bounds = array<i64: 1, 16, 32>}, {transform_indices = @transform_1, window_bounds = array<i64: 1, 16, 32>}, {pipeline_mode = #tpu.pipeline_mode<synchronous>, transform_indices = @transform_2, window_bounds = array<i64: 1, 32>}, {pipeline_mode = #tpu.pipeline_mode<synchronous>, transform_indices = @transform_3, window_bounds = array<i64: 1, 32>}, {pipeline_mode = #tpu.pipeline_mode<synchronous>, transform_indices = @transform_4, window_bounds = array<i64: 4, 32, 8>}, {pipeline_mode = #tpu.pipeline_mode<synchronous>, transform_indices = @transform_5, window_bounds = array<i64: 4, 32, 8>}, {pipeline_mode = #tpu.pipeline_mode<synchronous>, transform_indices = @transform_6, window_bounds = array<i64: 4, 32, 8>}, {pipeline_mode = #tpu.pipeline_mode<synchronous>, transform_indices = @transform_7, window_bounds = array<i64: 4, 8, 32>}, {pipeline_mode = #tpu.pipeline_mode<synchronous>, transform_indices = @transform_8, window_bounds = array<i64: 1, 32>}, {transform_indices = @transform_9, window_bounds = array<i64: 1, 16, 32>}]} {
    %c0 = arith.constant 0 : index
    %c0_0 = arith.constant 0 : index
    %c0_1 = arith.constant 0 : index
    %0 = vector.load %arg2[%c0, %c0_0, %c0_1] : memref<1x16x32xf32, #tpu.memory_space<vmem>>, vector<1x16x32xf32>
    %1 = vector.shape_cast %0 : vector<1x16x32xf32> to vector<16x32xf32>
    %c0_2 = arith.constant 0 : index
    %c0_3 = arith.constant 0 : index
    %c0_4 = arith.constant 0 : index
    %2 = vector.load %arg3[%c0_2, %c0_3, %c0_4] : memref<1x16x32xf32, #tpu.memory_space<vmem>>, vector<1x16x32xf32>
    %3 = vector.shape_cast %2 : vector<1x16x32xf32> to vector<16x32xf32>
    %c0_5 = arith.constant 0 : index
    %c0_6 = arith.constant 0 : index
    %4 = vector.load %arg4[%c0_5, %c0_6] : memref<1x32xf32, #tpu.memory_space<vmem>>, vector<1x32xf32>
    %c0_7 = arith.constant 0 : index
    %c0_8 = arith.constant 0 : index
    %5 = vector.load %arg5[%c0_7, %c0_8] : memref<1x32xf32, #tpu.memory_space<vmem>>, vector<1x32xf32>
    %cst = arith.constant dense<0.000000e+00> : vector<16xf32>
    %6 = vector.multi_reduction <add>, %1, %cst [1] : vector<16x32xf32> to vector<16xf32>
    %7 = vector.shape_cast %6 : vector<16xf32> to vector<16x1xf32>
    %cst_9 = arith.constant 3.200000e+01 : f32
    %8 = vector.broadcast %cst_9 : f32 to vector<16x1xf32>
    %9 = arith.divf %7, %8 : vector<16x1xf32>
    %10 = vector.broadcast %9 : vector<16x1xf32> to vector<16x32xf32>
    %11 = arith.subf %1, %10 : vector<16x32xf32>
    %12 = arith.mulf %11, %11 : vector<16x32xf32>
    %cst_10 = arith.constant dense<0.000000e+00> : vector<16xf32>
    %13 = vector.multi_reduction <add>, %12, %cst_10 [1] : vector<16x32xf32> to vector<16xf32>
    %14 = vector.shape_cast %13 : vector<16xf32> to vector<16x1xf32>
    %cst_11 = arith.constant 3.200000e+01 : f32
    %15 = vector.broadcast %cst_11 : f32 to vector<16x1xf32>
    %16 = arith.divf %14, %15 : vector<16x1xf32>
    %17 = vector.broadcast %9 : vector<16x1xf32> to vector<16x32xf32>
    %18 = arith.subf %1, %17 : vector<16x32xf32>
    %cst_12 = arith.constant 9.99999974E-6 : f32
    %19 = vector.broadcast %cst_12 : f32 to vector<16x1xf32>
    %20 = arith.addf %16, %19 : vector<16x1xf32>
    %21 = math.rsqrt %20 : vector<16x1xf32>
    %22 = vector.broadcast %21 : vector<16x1xf32> to vector<16x32xf32>
    %23 = arith.mulf %18, %22 : vector<16x32xf32>
    %24 = vector.broadcast %4 : vector<1x32xf32> to vector<16x32xf32>
    %25 = arith.mulf %23, %24 : vector<16x32xf32>
    %26 = vector.broadcast %5 : vector<1x32xf32> to vector<16x32xf32>
    %27 = arith.addf %25, %26 : vector<16x32xf32>
    %28 = arith.truncf %27 : vector<16x32xf32> to vector<16x32xbf16>
    %c0_13 = arith.constant 0 : index
    %c0_14 = arith.constant 0 : index
    %29 = vector.load %arg4[%c0_13, %c0_14] : memref<1x32xf32, #tpu.memory_space<vmem>>, vector<1x32xf32>
    %c0_15 = arith.constant 0 : index
    %c0_16 = arith.constant 0 : index
    %30 = vector.load %arg5[%c0_15, %c0_16] : memref<1x32xf32, #tpu.memory_space<vmem>>, vector<1x32xf32>
    %cst_17 = arith.constant dense<0.000000e+00> : vector<16xf32>
    %31 = vector.multi_reduction <add>, %3, %cst_17 [1] : vector<16x32xf32> to vector<16xf32>
    %32 = vector.shape_cast %31 : vector<16xf32> to vector<16x1xf32>
    %cst_18 = arith.constant 3.200000e+01 : f32
    %33 = vector.broadcast %cst_18 : f32 to vector<16x1xf32>
    %34 = arith.divf %32, %33 : vector<16x1xf32>
    %35 = vector.broadcast %34 : vector<16x1xf32> to vector<16x32xf32>
    %36 = arith.subf %3, %35 : vector<16x32xf32>
    %37 = arith.mulf %36, %36 : vector<16x32xf32>
    %cst_19 = arith.constant dense<0.000000e+00> : vector<16xf32>
    %38 = vector.multi_reduction <add>, %37, %cst_19 [1] : vector<16x32xf32> to vector<16xf32>
    %39 = vector.shape_cast %38 : vector<16xf32> to vector<16x1xf32>
    %cst_20 = arith.constant 3.200000e+01 : f32
    %40 = vector.broadcast %cst_20 : f32 to vector<16x1xf32>
    %41 = arith.divf %39, %40 : vector<16x1xf32>
    %42 = vector.broadcast %34 : vector<16x1xf32> to vector<16x32xf32>
    %43 = arith.subf %3, %42 : vector<16x32xf32>
    %cst_21 = arith.constant 9.99999974E-6 : f32
    %44 = vector.broadcast %cst_21 : f32 to vector<16x1xf32>
    %45 = arith.addf %41, %44 : vector<16x1xf32>
    %46 = math.rsqrt %45 : vector<16x1xf32>
    %47 = vector.broadcast %46 : vector<16x1xf32> to vector<16x32xf32>
    %48 = arith.mulf %43, %47 : vector<16x32xf32>
    %49 = vector.broadcast %29 : vector<1x32xf32> to vector<16x32xf32>
    %50 = arith.mulf %48, %49 : vector<16x32xf32>
    %51 = vector.broadcast %30 : vector<1x32xf32> to vector<16x32xf32>
    %52 = arith.addf %50, %51 : vector<16x32xf32>
    %53 = arith.truncf %52 : vector<16x32xf32> to vector<16x32xbf16>
    %cst_22 = arith.constant 0.000000e+00 : f32
    %54 = vector.broadcast %cst_22 : f32 to vector<16x32xf32>
    %c0_i32 = arith.constant 0 : i32
    %c4_i32 = arith.constant 4 : i32
    %55 = arith.addi %c0_i32, %c4_i32 : i32
    %c1_i32 = arith.constant 1 : i32
    %56 = scf.for %arg12 = %c0_i32 to %55 step %c1_i32 iter_args(%arg13 = %54) -> (vector<16x32xf32>)  : i32 {
      %64 = arith.index_cast %arg12 : i32 to index
      %c0_29 = arith.constant 0 : index
      %c0_30 = arith.constant 0 : index
      %65 = vector.load %arg6[%64, %c0_29, %c0_30] : memref<4x32x8xbf16, #tpu.memory_space<vmem>>, vector<1x32x8xbf16>
      %66 = vector.shape_cast %65 : vector<1x32x8xbf16> to vector<32x8xbf16>
      %cst_31 = arith.constant dense<0.000000e+00> : vector<16x8xf32>
      %67 = tpu.matmul %28, %66, %cst_31 {dimension_numbers = #tpu.dot_dimension_numbers<[1], [0], [0], [1], [0, 0, 1, 1], [], []>} : vector<16x32xbf16>, vector<32x8xbf16>, vector<16x8xf32> -> vector<16x8xf32>
      %cst_32 = arith.constant 0.353553385 : f32
      %68 = vector.broadcast %cst_32 : f32 to vector<16x8xf32>
      %69 = arith.mulf %67, %68 : vector<16x8xf32>
      %70 = arith.truncf %69 : vector<16x8xf32> to vector<16x8xbf16>
      %71 = arith.index_cast %arg12 : i32 to index
      %c0_33 = arith.constant 0 : index
      %c0_34 = arith.constant 0 : index
      %72 = vector.load %arg7[%71, %c0_33, %c0_34] : memref<4x32x8xbf16, #tpu.memory_space<vmem>>, vector<1x32x8xbf16>
      %73 = vector.shape_cast %72 : vector<1x32x8xbf16> to vector<32x8xbf16>
      %cst_35 = arith.constant dense<0.000000e+00> : vector<16x8xf32>
      %74 = tpu.matmul %53, %73, %cst_35 {dimension_numbers = #tpu.dot_dimension_numbers<[1], [0], [0], [1], [0, 0, 1, 1], [], []>} : vector<16x32xbf16>, vector<32x8xbf16>, vector<16x8xf32> -> vector<16x8xf32>
      %75 = arith.truncf %74 : vector<16x8xf32> to vector<16x8xbf16>
      %76 = arith.index_cast %arg12 : i32 to index
      %c0_36 = arith.constant 0 : index
      %c0_37 = arith.constant 0 : index
      %77 = vector.load %arg8[%76, %c0_36, %c0_37] : memref<4x32x8xbf16, #tpu.memory_space<vmem>>, vector<1x32x8xbf16>
      %78 = vector.shape_cast %77 : vector<1x32x8xbf16> to vector<32x8xbf16>
      %cst_38 = arith.constant dense<0.000000e+00> : vector<16x8xf32>
      %79 = tpu.matmul %53, %78, %cst_38 {dimension_numbers = #tpu.dot_dimension_numbers<[1], [0], [0], [1], [0, 0, 1, 1], [], []>} : vector<16x32xbf16>, vector<32x8xbf16>, vector<16x8xf32> -> vector<16x8xf32>
      %80 = arith.truncf %79 : vector<16x8xf32> to vector<16x8xbf16>
      %cst_39 = arith.constant dense<0.000000e+00> : vector<16x16xf32>
      %81 = tpu.matmul %70, %75, %cst_39 {dimension_numbers = #tpu.dot_dimension_numbers<[1], [1], [0], [0], [0, 0, 1, 0], [], []>} : vector<16x8xbf16>, vector<16x8xbf16>, vector<16x16xf32> -> vector<16x16xf32>
      %cst_40 = arith.constant dense<0xFF800000> : vector<16xf32>
      %82 = vector.multi_reduction <maximumf>, %81, %cst_40 [1] : vector<16x16xf32> to vector<16xf32>
      %83 = vector.shape_cast %82 : vector<16xf32> to vector<16x1xf32>
      %84 = vector.broadcast %83 : vector<16x1xf32> to vector<16x16xf32>
      %85 = arith.subf %81, %84 : vector<16x16xf32>
      %86 = math.exp %85 : vector<16x16xf32>
      %cst_41 = arith.constant dense<0.000000e+00> : vector<16xf32>
      %87 = vector.multi_reduction <add>, %86, %cst_41 [1] : vector<16x16xf32> to vector<16xf32>
      %88 = vector.shape_cast %87 : vector<16xf32> to vector<16x1xf32>
      %89 = arith.truncf %86 : vector<16x16xf32> to vector<16x16xbf16>
      %cst_42 = arith.constant dense<0.000000e+00> : vector<16x8xf32>
      %90 = tpu.matmul %89, %80, %cst_42 {dimension_numbers = #tpu.dot_dimension_numbers<[1], [0], [0], [1], [0, 0, 1, 1], [], []>} : vector<16x16xbf16>, vector<16x8xbf16>, vector<16x8xf32> -> vector<16x8xf32>
      %91 = tpu.reciprocal %88 {approx = true} : vector<16x1xf32> -> vector<16x1xf32>
      %92 = vector.broadcast %91 : vector<16x1xf32> to vector<16x8xf32>
      %93 = arith.mulf %90, %92 : vector<16x8xf32>
      %94 = arith.truncf %93 : vector<16x8xf32> to vector<16x8xbf16>
      %95 = arith.index_cast %arg12 : i32 to index
      %c0_43 = arith.constant 0 : index
      %c0_44 = arith.constant 0 : index
      %96 = vector.load %arg9[%95, %c0_43, %c0_44] : memref<4x8x32xbf16, #tpu.memory_space<vmem>>, vector<1x8x32xbf16>
      %97 = vector.shape_cast %96 : vector<1x8x32xbf16> to vector<8x32xbf16>
      %cst_45 = arith.constant dense<0.000000e+00> : vector<16x32xf32>
      %98 = tpu.matmul %94, %97, %cst_45 {dimension_numbers = #tpu.dot_dimension_numbers<[1], [0], [0], [1], [0, 0, 1, 1], [], []>} : vector<16x8xbf16>, vector<8x32xbf16>, vector<16x32xf32> -> vector<16x32xf32>
      %99 = arith.addf %arg13, %98 : vector<16x32xf32>
      scf.yield %99 : vector<16x32xf32>
    }
    %c4_i32_23 = arith.constant 4 : i32
    %c0_24 = arith.constant 0 : index
    %c0_25 = arith.constant 0 : index
    %57 = vector.load %arg10[%c0_24, %c0_25] : memref<1x32xf32, #tpu.memory_space<vmem>>, vector<1x32xf32>
    %58 = vector.broadcast %57 : vector<1x32xf32> to vector<16x32xf32>
    %59 = arith.addf %56, %58 : vector<16x32xf32>
    %60 = arith.addf %1, %59 : vector<16x32xf32>
    %c0_26 = arith.constant 0 : index
    %c0_27 = arith.constant 0 : index
    %c0_28 = arith.constant 0 : index
    %61 = vector.load %arg11[%c0_26, %c0_27, %c0_28] : memref<1x16x32xf32, #tpu.memory_space<vmem>>, vector<1x16x32xf32>
    %62 = vector.shape_cast %61 : vector<1x16x32xf32> to vector<16x32xf32>
    %63 = vector.shape_cast %60 : vector<16x32xf32> to vector<1x16x32xf32>
    tpu.vector_store %arg11[%c0_26, %c0_27, %c0_28], %63 {strides = array<i32>} : memref<1x16x32xf32, #tpu.memory_space<vmem>>, vector<1x16x32xf32>,
    return
  }
  func.func @transform_0(%arg0: i32, %arg1: i32) -> (i32, i32, i32) {
    %c0_i32 = arith.constant 0 : i32
    %c0_i32_0 = arith.constant 0 : i32
    return %arg0, %arg1, %c0_i32 : i32, i32, i32
  }
  func.func @transform_1(%arg0: i32, %arg1: i32) -> (i32, i32, i32) {
    %c0_i32 = arith.constant 0 : i32
    %c0_i32_0 = arith.constant 0 : i32
    %c0_i32_1 = arith.constant 0 : i32
    return %arg0, %c0_i32, %c0_i32_0 : i32, i32, i32
  }
  func.func @transform_2(%arg0: i32, %arg1: i32) -> (i32, i32) {
    %c0_i32 = arith.constant 0 : i32
    %c0_i32_0 = arith.constant 0 : i32
    %c0_i32_1 = arith.constant 0 : i32
    return %c0_i32, %c0_i32_0 : i32, i32
  }
  func.func @transform_3(%arg0: i32, %arg1: i32) -> (i32, i32) {
    %c0_i32 = arith.constant 0 : i32
    %c0_i32_0 = arith.constant 0 : i32
    %c0_i32_1 = arith.constant 0 : i32
    return %c0_i32, %c0_i32_0 : i32, i32
  }
  func.func @transform_4(%arg0: i32, %arg1: i32) -> (i32, i32, i32) {
    %c0_i32 = arith.constant 0 : i32
    %c0_i32_0 = arith.constant 0 : i32
    %c0_i32_1 = arith.constant 0 : i32
    %c0_i32_2 = arith.constant 0 : i32
    return %c0_i32, %c0_i32_0, %c0_i32_1 : i32, i32, i32
  }
  func.func @transform_5(%arg0: i32, %arg1: i32) -> (i32, i32, i32) {
    %c0_i32 = arith.constant 0 : i32
    %c0_i32_0 = arith.constant 0 : i32
    %c0_i32_1 = arith.constant 0 : i32
    %c0_i32_2 = arith.constant 0 : i32
    return %c0_i32, %c0_i32_0, %c0_i32_1 : i32, i32, i32
  }
  func.func @transform_6(%arg0: i32, %arg1: i32) -> (i32, i32, i32) {
    %c0_i32 = arith.constant 0 : i32
    %c0_i32_0 = arith.constant 0 : i32
    %c0_i32_1 = arith.constant 0 : i32
    %c0_i32_2 = arith.constant 0 : i32
    return %c0_i32, %c0_i32_0, %c0_i32_1 : i32, i32, i32
  }
  func.func @transform_7(%arg0: i32, %arg1: i32) -> (i32, i32, i32) {
    %c0_i32 = arith.constant 0 : i32
    %c0_i32_0 = arith.constant 0 : i32
    %c0_i32_1 = arith.constant 0 : i32
    %c0_i32_2 = arith.constant 0 : i32
    return %c0_i32, %c0_i32_0, %c0_i32_1 : i32, i32, i32
  }
  func.func @transform_8(%arg0: i32, %arg1: i32) -> (i32, i32) {
    %c0_i32 = arith.constant 0 : i32
    %c0_i32_0 = arith.constant 0 : i32
    %c0_i32_1 = arith.constant 0 : i32
    return %c0_i32, %c0_i32_0 : i32, i32
  }
  func.func @transform_9(%arg0: i32, %arg1: i32) -> (i32, i32, i32) {
    %c0_i32 = arith.constant 0 : i32
    %c0_i32_0 = arith.constant 0 : i32
    return %arg0, %arg1, %c0_i32 : i32, i32, i32
  }
}

</mosaic_0001>

<bundles_post_ra>
// kernel: tpu_custom_call.1
= control target key start
LH: loop header
LB: loop body
LE: loop exit
PB: predicated region body
PF: predicated region fallthrough
CT: control target
= control target key end

     0   :  { %s1560_s0 = inlined_call_operand.vmem [shape: f32[2,16,32], index: 0, kind: input, shape index: {}]   ;;  %s1561_s1 = inlined_call_operand.vmem [shape: f32[2,16,32], index: 1, kind: input, shape index: {}]   ;;  %s1562_s2 = inlined_call_operand.vmem [shape: f32[1,32], index: 2, kind: input, shape index: {}]   ;;  %s1563_s3 = inlined_call_operand.vmem [shape: f32[1,32], index: 3, kind: input, shape index: {}]   ;;  %s1564_s4 = inlined_call_operand.vmem [shape: bf16[4,32,8], index: 4, kind: input, shape index: {}]   ;;  %s1565_s5 = inlined_call_operand.vmem [shape: bf16[4,32,8], index: 5, kind: input, shape index: {}]   ;;  %s1566_s6 = inlined_call_operand.vmem [shape: bf16[4,32,8], index: 6, kind: input, shape index: {}]   ;;  %s1567_s7 = inlined_call_operand.vmem [shape: bf16[4,8,32], index: 7, kind: input, shape index: {}]   ;;  %s1568_s8 = inlined_call_operand.vmem [shape: f32[1,32], index: 8, kind: input, shape index: {}]   ;;  %s1569_s9 = inlined_call_operand.hbm [shape: f32[2,16,32], index: 9, kind: output, shape index: {}]  }
   0x1   :  { %1571 = sst [smem:[#allocation5_spill]] %s1560_s0 }
   0x2   :  { %14 = vsyncpa [#allocation3], 0 }
   0x3   :  { %16 = vsyncpa [#allocation3 + $0x1], 0  ;;  %s1333_s30 = smov 0   ;;  %s1335_s10 = smov 0  }
   0x4   :  { %s1337_s11 = smov 0   ;;  %s1339_s12 = smov 0  }
   0x5   :  { %s1341_s13 = smov 0   ;;  %s1343_s14 = smov 0  }
   0x6 LB: > { %s971_s15 = sadd.s32 4294967295, %s1264_s14   ;;  %s972_s16 = sadd.s32 4294967294, %s1264_s14   ;;  %s1264_s14 = sphi %s1343_s14, %s22_s14   ;;  %s1260_s13 = sphi %s1341_s13, %s1582_s13   ;;  %s1256_s12 = sphi %s1339_s12, %s1581_s12   ;;  %s1252_s11 = sphi %s1337_s11, %s1580_s11   ;;  %s1248_s10 = sphi %s1335_s10, %s1579_s10   ;;  %s1244_s30 = sphi %s1333_s30, %s1578_s30  }
   0x7   : > { %s34_s17 = sadd.s32 1, %s1260_s13  ;;  %s244_s18 = sadd.s32 1, %s1252_s11 }
   0x8   : > { %p36_p0 = scmp.ge.s32.totalorder %s34_s17, 2  ;;  %p254_p1 = scmp.ne.s32.totalorder %s1252_s11, %s1248_s10 }
   0x9   : > { %p255_p2 = scmp.eq.s32.totalorder %s971_s15, 1  ;;  %p260_p3 = scmp.ne.s32.totalorder %s1248_s10, %s1244_s30 }
   0xa   : > { %s1584_s17 = smov (%p36_p0, %s34_s17), 0  ;;  %p261_p5 = scmp.eq.s32.totalorder %s972_s16, 1 }
   0xb   : > { %p1373_p4 = por %p255_p2, %p254_p1  ;;  %s239_s20 = ssub.s32 %s1260_s13, %s1584_s17 }
   0xc   : > { %p975_p6 = scmp.ge.s32.totalorder %s1264_s14, 1  ;;  %p242_p7 = scmp.eq.s32.totalorder %s239_s20, 0 }
   0xd   : > { %p1380_p8 = por %p261_p5, %p260_p3  ;;  %p321_p9 = scmp.lt.s32.totalorder %s1264_s14, 3 }
   0xe   : > { %s1386_s22 = scalar_select %p242_p7, %s1252_s11, %s244_s18  }
   0xf   : > { %p322_p10 = pnand %p975_p6, %p321_p9 }
  0x10   : > { %p367_p11 = scmp.lt.s32.totalorder (!%p322_p10), %s1256_s12, 1  ;;  %vm389_vm0 = vcmask (!%p322_p10), 261120   ;;  %s1574_s0 = sld [smem:[#allocation5_spill]] (!%p322_p10)  ;;  %v981_v42 = vld [vmem:[%s1562_s2] ss:$0 sm:$0xff] (!%p322_p10)  ;;  %v1434_v60 = vmov (!%p322_p10), 0.0  }
  0x11   : > { %325 = sbr.rel (%p322_p10) target bundleno = 1414 (0x586), region = 56  ;;  %s1570_s16 = sand.u32 (!%p322_p10), 1, %s1248_s10   ;;  %v982_v47 = vld [vmem:[%s1563_s3] ss:$0 sm:$0xff] (!%p322_p10)  ;;  %v1436_v61 = vmov (!%p322_p10), 0.0  }
  0x12   : > { %s1415_s18 = sshll.u32 (!%p322_p10), %s1570_s16, 4 }
  0x13   : > { %s1432_s26 = scalar_lea.vmem (!%p322_p10), [#allocation2], %s1415_s18 }
  0x18   : > { %s368_s23 = scalar_select %p367_p11, %s1256_s12, 1 }
  0x1a   : > { %s1006_s24 = sshll.u32 %s368_s23, 4 }
  0x1b   : > { %s374_s27 = scalar_lea.vmem %s1574_s0, %s1006_s24  ;;  %s380_s15 = scalar_lea.vmem %s1561_s1, %s1006_s24 }
  0x1c   : > { %v1396_v0 = vld [vmem:[%s374_s27] sm:$0xff]  ;;  %v1398_v2 = vld [vmem:[%s374_s27 + $0x8] sm:$0xff]  ;;  %s1438_s27 = smov 0  }
  0x1d   : > { %v385_v1 = vld [vmem:[%s380_s15] sm:$0xff]  ;;  %v390_v3 = vsel %vm389_vm0, %v1396_v0, 0.0  ;;  %v386_v5 = vld [vmem:[%s380_s15 + $0x8] sm:$0xff]  ;;  %v393_v6 = vsel %vm389_vm0, %v1398_v2, 0.0 }
  0x1e   : > { %v434_v4 = vsel %vm389_vm0, %v385_v1, 0.0  ;;  %391 = vadd.xlane.f32.xlu0 %v390_v3  ;;  %v437_v7 = vsel %vm389_vm0, %v386_v5, 0.0 }
  0x1f   : > { %435 = vadd.xlane.f32.xlu1 %v434_v4 }
  0x22   : > { %394 = vadd.xlane.f32.xlu0 %v393_v6 }
  0x23   : > { %438 = vadd.xlane.f32.xlu1 %v437_v7 }
  0xab   : > { %v392_v8 = vpop.xlane.xlu0 %391 }
  0xac   : > { %v436_v9 = vpop.xlane.xlu1 %435  ;;  %v397_v10 = vmul.f32 0.03125, %v392_v8 }
  0xad   : > { %v440_v11 = vmul.f32 0.03125, %v436_v9 }
  0xae   : > { %v399_v12 = vsub.f32 %v1396_v0, %v397_v10 }
  0xaf   : > { %v442_v13 = vsub.f32 %v385_v1, %v440_v11  ;;  %v395_v14 = vpop.xlane.xlu0 %394 }
  0xb0   : > { %v439_v15 = vpop.xlane.xlu1 %438  ;;  %v398_v16 = vmul.f32 0.03125, %v395_v14  ;;  %v401_v18 = vmul.f32 %v399_v12, %v399_v12 }
  0xb1   : > { %v441_v17 = vmul.f32 0.03125, %v439_v15  ;;  %v444_v19 = vmul.f32 %v442_v13, %v442_v13 }
  0xb2   : > { %v400_v20 = vsub.f32 %v1398_v2, %v398_v16  ;;  %v403_v22 = vsel %vm389_vm0, %v401_v18, 0.0 }
  0xb3   : > { %v443_v21 = vsub.f32 %v386_v5, %v441_v17  ;;  %404 = vadd.xlane.f32.xlu0 %v403_v22  ;;  %v446_v23 = vsel %vm389_vm0, %v444_v19, 0.0 }
  0xb4   : > { %v402_v24 = vmul.f32 %v400_v20, %v400_v20 }
  0xb5   : > { %v445_v25 = vmul.f32 %v443_v21, %v443_v21 }
  0xb6   : > { %v406_v26 = vsel %vm389_vm0, %v402_v24, 0.0 }
  0xb7   : > { %447 = vadd.xlane.f32.xlu0 %v446_v23  ;;  %407 = vadd.xlane.f32.xlu1 %v406_v26  ;;  %v449_v27 = vsel %vm389_vm0, %v445_v25, 0.0 }
  0xbb   : > { %450 = vadd.xlane.f32.xlu1 %v449_v27 }
 0x140   : > { %v405_v28 = vpop.xlane.xlu0 %404 }
 0x141   : > { %v409_v29 = vmul.f32 0.03125, %v405_v28 }
 0x143   : > { %v411_v30 = vadd.f32 1e-05, %v409_v29 }
 0x144   : > { %v408_v31 = vpop.xlane.xlu1 %407  ;;  %v448_v32 = vpop.xlane.xlu0 %447 }
 0x145   : > { %1152 = vrsqrt.f32 %v411_v30  ;;  %v410_v33 = vmul.f32 0.03125, %v408_v31  ;;  %v452_v34 = vmul.f32 0.03125, %v448_v32 }
 0x147   : > { %v412_v35 = vadd.f32 1e-05, %v410_v33  ;;  %v454_v36 = vadd.f32 1e-05, %v452_v34 }
 0x148   : > { %v451_v37 = vpop.xlane.xlu1 %450 }
 0x149   : > { %1154 = vrsqrt.f32 %v412_v35  ;;  %v453_v38 = vmul.f32 0.03125, %v451_v37 }
 0x14a   : > { %1156 = vrsqrt.f32 %v454_v36 }
 0x14b   : > { %v455_v39 = vadd.f32 1e-05, %v453_v38 }
 0x14d   : > { %1158 = vrsqrt.f32 %v455_v39 }
 0x14f   : > { %v1153_v40 = vpop.eup %1152 }
 0x150   : > { %v415_v41 = vmul.f32 %v1153_v40, %v399_v12 }
 0x152   : > { %v423_v45 = vmul.f32 %v981_v42, %v415_v41 }
 0x153   : > { %v1155_v43 = vpop.eup %1154 }
 0x154   : > { %v1157_v44 = vpop.eup %1156  ;;  %v416_v46 = vmul.f32 %v1155_v43, %v400_v20  ;;  %v1423_v51 = vadd.f32 %v982_v47, %v423_v45 }
 0x155   : > { %v458_v48 = vmul.f32 %v1157_v44, %v442_v13 }
 0x156   : > { %v424_v49 = vmul.f32 %v981_v42, %v416_v46 }
 0x157   : > { %v1159_v50 = vpop.eup %1158  ;;  %v460_v53 = vmul.f32 %v981_v42, %v458_v48 }
 0x158   : > { %v1425_v52 = vadd.f32 %v982_v47, %v424_v49  ;;  %v459_v54 = vmul.f32 %v1159_v50, %v443_v21 }
 0x159   : > { %v462_v57 = vadd.f32 %v982_v47, %v460_v53 }
 0x15a   : > { %v433_v55 = vpack.c.bf16 %v1425_v52, %v1423_v51  ;;  %v461_v56 = vmul.f32 %v981_v42, %v459_v54 }
 0x15c   : > { %v463_v58 = vadd.f32 %v982_v47, %v461_v56 }
 0x15e   : > { %v1429_v59 = vpack.c.bf16 %v463_v58, %v462_v57 }
 0x15f LB: >> { %v1278_v62 = vmov 0.0   ;;  %s1008_s28 = sshll.u32 %s1276_s27, 4  ;;  %vm1279_vm1 = vmmov 0   ;;  %vm662_vm2 = vcmask 64512   ;;  %vm710_vm3 = vcmask 130048   ;;  %s1276_s27 = sphi %s1438_s27, %s470_s27   ;;  %v1272_v61 = vphi %v1436_v61, %v1576_v61   ;;  %v1268_v60 = vphi %v1434_v60, %v1575_v60  }
 0x160   : >> { %1035 = vmatprep.subr.bf16.mxu1 %v1278_v62  ;;  %1027 = vmatprep.subr.bf16.mxu0 %v1278_v62  ;;  %s540_s18 = scalar_lea.vmem %s1565_s5, %s1008_s28  ;;  %s475_s24 = scalar_lea.vmem %s1564_s4, %s1008_s28  ;;  %vm785_vm4 = vcmask 1043456  }
 0x161   : >> { %1039 = vmatprep.mubr.msk.bf16.mxu1 %vm1279_vm1, %v1278_v62  ;;  %1031 = vmatprep.mubr.msk.bf16.mxu0 %vm1279_vm1, %v1278_v62  ;;  %v1160_v63 = vld [vmem:[%s540_s18] sm:$0xff]   ;;  %v1162_v3 = vld [vmem:[%s540_s18 + $0x8] sm:$0xff]   ;;  %s603_s0 = scalar_lea.vmem %s1566_s6, %s1008_s28 }
 0x162   : >> { %v1161_v1 = vld [vmem:[%s475_s24] sm:$0xff]   ;;  %1036 = vmatpush3.bf16.msra.mxu1 %v1160_v63  ;;  %v1163_v4 = vld [vmem:[%s475_s24 + $0x8] sm:$0xff]  }
 0x163   : >> { %1037 = vmatprep.subr.bf16.mxu1 %v1278_v62  ;;  %1028 = vmatpush3.bf16.msra.mxu0 %v1161_v1  ;;  %v1164_v5 = vld [vmem:[%s603_s0] sm:$0xff]   ;;  %v1165_v6 = vld [vmem:[%s603_s0 + $0x8] sm:$0xff]   ;;  %s998_s0 = sshll.u32 %s1276_s27, 2  ;;  %s470_s27 = sadd.s32 1, %s1276_s27  }
 0x164   : >> { %1029 = vmatprep.subr.bf16.mxu0 %v1278_v62  ;;  %s780_s29 = scalar_lea.vmem %s1567_s7, %s998_s0  ;;  %p467_p12 = scmp.ge.s32.totalorder %s470_s27, 4  }
 0x165   : >> { %v781_v42 = vld [vmem:[%s780_s29] sm:$0xf]  ;;  %s1011_s20 = sshll.u32 (%p467_p12), %s1256_s12, 8  ;;  %s861_s23 = sshll.u32 (%p467_p12), %s1432_s26, 4  ;;  %s1504_s23 = int_to_ptr.vmem [resolvable:$true] %s861_s23 }
 0x166   : >> { %1038 = vmatpush3.bf16.msra.mxu1 %v1162_v3  ;;  %v787_v43 = vsel %vm785_vm4, %v781_v42, 0  ;;  %s1502_s0 = scalar_lea.hbm (%p467_p12), %s1569_s9, %s1011_s20  ;;  %s1577_s12 = sand.u32 (%p467_p12), 1, %s1248_s10  }
 0x167   : >> { %1030 = vmatpush3.bf16.msra.mxu0 %v1163_v4  ;;  %1051 = vmatprep.subr.bf16.mxu1 %v1278_v62  ;;  %s1514_s27 = scalar_lea.sflag (%p467_p12), [#allocation3], %s1577_s12  ;;  %s1174_s16 = scalar_lea.vmem (%p467_p12), %s1504_s23, 256 }
 0x168   : >> { %1043 = vmatprep.subr.bf16.mxu0 %v1278_v62  ;;  %p1175_p13 = scmp.ne.s32.totalorder (%p467_p12), %s1504_s23, %s1174_s16  ;;  %s1280_s28 = smov (%p467_p12), [#allocation2]  }
 0x169   : >> { %1040 = vmatmul.mubr.msk.bf16.vlgmr.msra.gmra.mrb[0].mxu1 %vm389_vm0, %v1429_v59  ;;  %s1178_s29 = sshll.u32 (%p467_p12), %s1280_s28, 4  ;;  %s1179_s29 = int_to_ptr.vmem [resolvable:$false] %s1178_s29 }
 0x16a   : >> { %1032 = vmatmul.mubr.msk.bf16.vlgmr.msra.gmra.mrb[0].mxu0 %vm389_vm0, %v433_v55  ;;  %1053 = vmatprep.mubr.msk.bf16.mxu1 %vm1279_vm1, %v1278_v62  ;;  %p1176_p0 = pnand (%p467_p12), %p1175_p13, %p1373_p4  ;;  %s1180_s15 = scalar_lea.vmem (%p467_p12), %s1179_s29, 512 }
 0x16b   : >> { %1047 = vmatprep.mubr.msk.bf16.mxu0 %vm1279_vm1, %v1278_v62  ;;  %1044 = vmatpush3.bf16.msra.mxu0 %v1164_v5  ;;  %p1181_p2 = scmp.lt.s32.totalorder (%p467_p12), %s1504_s23, %s1179_s29  ;;  %p1182_p3 = scmp.lt.s32.totalorder (%p467_p12), %s1180_s15, %s1174_s16 }
 0x16c   : >> { %1045 = vmatprep.subr.bf16.mxu0 %v1278_v62  ;;  %p1177_p1 = pneg (%p467_p12), %p1176_p0 }
 0x16d   : > { %p1183_p5 = por (%p467_p12), %p1182_p3, %p1181_p2 }
 0x16f   : >> { %1046 = vmatpush3.bf16.msra.mxu0 %v1165_v6  ;;  %p1184_p6 = pnand (%p467_p12), %p1183_p5, %p1177_p1 }
 0x170   : >> { %1057 = vmatprep.subr.bf16.mxu0 %v1278_v62 }
 0x172   : >> { %1048 = vmatmul.mubr.msk.bf16.vlgmr.msra.gmra.mrb[4].mxu0 %vm389_vm0, %v1429_v59 }
 0x173   : >> { %1059 = vmatprep.mubr.msk.bf16.mxu0 %vm1279_vm1, %v1278_v62 }
 0x23c   : >> { %v594_v7 = vpop.f32.mrb[0].mxu1 }
 0x23d   : >> { %v1041_v8 = vpop.f32.mrb[1].mxu1  ;;  %v529_v9 = vpop.f32.mrb[0].mxu0 }
 0x23e   : >> { %v597_v10 = vpop.f32.mrb[2].mxu1  ;;  %v536_v11 = vmul.f32 0.35355338, %v529_v9  ;;  %v1033_v12 = vpop.f32.mrb[1].mxu0 }
 0x23f   : >> { %v601_v13 = vpack.c.bf16 %v597_v10, %v594_v7  ;;  %v1042_v14 = vpop.f32.mrb[3].mxu1  ;;  %v532_v15 = vpop.f32.mrb[2].mxu0 }
 0x240   : >> { %v537_v16 = vmul.f32 0.35355338, %v532_v15  ;;  %v1034_v17 = vpop.f32.mrb[3].mxu0 }
 0x241   : >> { %v667_v18 = vsel %vm662_vm2, %v601_v13, 0 }
 0x242   : >> { %v538_v19 = vpack.c.bf16 %v537_v16, %v536_v11  ;;  %1052 = vmatpush3.bf16.xpose.msra.mxu1 %v667_v18 }
 0x243   : >> { %1063 = vmatprep.subr.bf16.mxu1 %v1278_v62 }
 0x245   : >> { %v654_v26 = vpop.f32.mrb[4].mxu0 }
 0x246   : >> { %v1049_v27 = vpop.f32.mrb[5].mxu0 }
 0x247   : >> { %v657_v28 = vpop.f32.mrb[6].mxu0 }
 0x248   : >> { %v661_v29 = vpack.c.bf16 %v657_v28, %v654_v26  ;;  %v1050_v30 = vpop.f32.mrb[7].mxu0 }
 0x249   : >> { %1054 = vmatmul.mubr.msk.bf16.vlgmr.msra.gmra.mrb[4].mxu1 %vm662_vm2, %v538_v19 }
 0x24a   : >> { %1065 = vmatprep.mubr.msk.bf16.mxu1 %vm1279_vm1, %v1278_v62  ;;  %1058 = vmatpush3.bf16.msra.mxu0 %v661_v29 }
 0x24b   : >> { %1064 = vmatpush3.bf16.msra.mxu1 %v787_v43 }
 0x31c   : >> { %v703_v20 = vpop.f32.mrb[4].mxu1 }
 0x31d   : >> { %v1055_v21 = vpop.f32.mrb[5].mxu1  ;;  %v711_v22 = vsel %vm710_vm3, %v703_v20, -inf }
 0x31e   : >> { %712 = vmax.xlane.f32.xlu0 %v711_v22  ;;  %v706_v23 = vpop.f32.mrb[6].mxu1 }
 0x31f   : >> { %v1056_v24 = vpop.f32.mrb[7].mxu1  ;;  %v714_v25 = vsel %vm710_vm3, %v706_v23, -inf }
 0x322   : >> { %715 = vmax.xlane.f32.xlu0 %v714_v25 }
 0x3ab   : >> { %v713_v31 = vpop.xlane.xlu0 %712 }
 0x3ac   : >> { %v717_v32 = vsub.f32 %v703_v20, %v713_v31 }
 0x3ae   : >> { %v719_v33 = vmul.f32 1.442695, %v717_v32 }
 0x3af   : >> { %v716_v34 = vpop.xlane.xlu0 %715 }
 0x3b0   : >> { %1166 = vpow2.f32 %v719_v33  ;;  %v718_v35 = vsub.f32 %v706_v23, %v716_v34 }
 0x3b2   : >> { %v721_v36 = vmul.f32 1.442695, %v718_v35 }
 0x3b4   : >> { %1168 = vpow2.f32 %v721_v36 }
 0x3ba   : >> { %v1167_v37 = vpop.eup %1166 }
 0x3bb   : >> { %v723_v38 = vsel %vm710_vm3, %v1167_v37, 0.0 }
 0x3bc   : >> { %724 = vadd.xlane.f32.xlu1 %v723_v38 }
 0x3be   : >> { %v1169_v39 = vpop.eup %1168 }
 0x3bf   : >> { %v726_v40 = vsel %vm710_vm3, %v1169_v39, 0.0  ;;  %v729_v41 = vpack.c.bf16 %v1169_v39, %v1167_v37 }
 0x3c0   : >> { %727 = vadd.xlane.f32.xlu1 %v726_v40 }
 0x3c1   : >> { %1060 = vmatmul.mubr.msk.bf16.vlgmr.msra.gmra.mrb[8].mxu0 %vm710_vm3, %v729_v41 }
 0x449   : >> { %v725_v44 = vpop.xlane.xlu1 %724 }
 0x44a   : >> { %1170 = vrcp.f32 %v725_v44 }
 0x44d   : >> { %v728_v45 = vpop.xlane.xlu1 %727 }
 0x44e   : >> { %1172 = vrcp.f32 %v728_v45 }
 0x454   : >> { %v1171_v47 = vpop.eup %1170 }
 0x458   : >> { %v1173_v49 = vpop.eup %1172 }
 0x494   : >> { %v767_v46 = vpop.f32.mrb[8].mxu0 }
 0x495   : >> { %v1061_v48 = vpop.f32.mrb[9].mxu0  ;;  %v776_v53 = vmul.f32 %v1171_v47, %v767_v46 }
 0x496   : >> { %v770_v50 = vpop.f32.mrb[10].mxu0 }
 0x497   : >> { %v777_v54 = vmul.f32 %v1173_v49, %v770_v50  ;;  %v1062_v56 = vpop.f32.mrb[11].mxu0 }
 0x499   : >> { %v778_v57 = vpack.c.bf16 %v777_v54, %v776_v53 }
 0x49b   : >> { %1066 = vmatmul.mubr.msk.bf16.vlgmr.msra.gmra.mrb[8].mxu1 %vm662_vm2, %v778_v57 }
 0x56d   : > { %469 = sbr.rel (!%p467_p12) target bundleno = 351 (0x15f), region = 105 }
 0x56e   : >> { %v823_v58 = vpop.f32.mrb[8].mxu1 }
 0x56f   : >> { %v830_v62 = vadd.f32 %v1272_v61, %v823_v58   ;;  %v1067_v63 = vpop.f32.mrb[9].mxu1 }
 0x570   : >> { %v826_v1 = vpop.f32.mrb[10].mxu1 }
 0x571   : >> { %v831_v3 = vadd.f32 %v1268_v60, %v826_v1   ;;  %v1068_v4 = vpop.f32.mrb[11].mxu1  ;;  %v1576_v61 = vmov %v830_v62 }
 0x572   : > { %v1000_v61 = vld [vmem:[%s1568_s8] ss:$0 sm:$0xff] (%p467_p12) }
 0x573   : >> { %v1575_v60 = vmov %v831_v3  ;;  %v839_v5 = vadd.f32 (%p467_p12), %v1000_v61, %v830_v62  ;;  %v840_v6 = vadd.f32 (%p467_p12), %v1000_v61, %v831_v3 }
 0x575   : > { %v841_v51 = vadd.f32 %v839_v5, %v1396_v0  ;;  %v842_v52 = vadd.f32 %v840_v6, %v1398_v2 }
 0x577   : > { %843 = vst.msk [vmem:[%s1432_s26] sm:$0xff] %vm389_vm0, %v841_v51  ;;  %844 = vst.msk [vmem:[%s1432_s26 + $0x8] sm:$0xff] %vm389_vm0, %v842_v52 }
 0x578   : > { %1187 = shalt.err (!%p1184_p6)
}
 0x579   : > { %s1188_s26 = scalar_lea.hbm %s1502_s0, 256  ;;  %s1192_s24 = scalar_lea.hbm %s1569_s9, 512 }
 0x57a   : > { %p1189_p7 = scmp.ne.s32.totalorder %s1502_s0, %s1188_s26  ;;  %p1193_p11 = scmp.lt.u32.totalorder %s1502_s0, %s1569_s9 }
 0x57b   : > { %p1194_p12 = scmp.lt.u32.totalorder %s1192_s24, %s1188_s26  ;;  %p1196_p0 = scmp.lt.u32.totalorder %s1188_s26, %s1502_s0 }
 0x57c   : > { %p1190_p9 = pnand %p1189_p7, %p1373_p4 }
 0x57d   : > { %p1195_p13 = por %p1194_p12, %p1193_p11 }
 0x57e   : > { %p1191_p10 = pneg %p1190_p9 }
 0x57f   : > { %p1197_p1 = por %p1196_p0, %p1195_p13 }
 0x581   : > { %p1198_p2 = pnand %p1197_p1, %p1191_p10 }
 0x583   : > { %1201 = shalt.err (!%p1198_p2)
}
 0x584   : > { %s1281_s16 = smov 128   ;;  %s1282_s28 = smov 8  }
 0x585   : > { %1069 = dma.vmem_to_hbm [thread:$0]  (%p1373_p4), %s1504_s23, 256, %s1502_s0, %s1514_s27, %s1281_s16, %s1281_s16, %s1282_s28  }
 0x586 PF: > { %p1075_p3 = scmp.ge.s32.totalorder %s1264_s14, 2  ;;  %s876_s29 = sand.u32 1, %s1244_s30  }
 0x587   : > { %s877_s15 = scalar_lea.sflag [#allocation3], %s876_s29 }
 0x588   : > { %p1072_p5 = pnand %p1075_p3, %p1380_p8 }
 0x58a   : > { %1239 = dma.done.wait (!%p1072_p5), %s877_s15, 256  }
 0x58b   : > { %1241 = vsyncadd (!%p1072_p5), %s877_s15, 4294967040  ;;  %s22_s14 = sadd.s32 1, %s1264_s14   ;;  %s1578_s30 = smov %s1248_s10 }
 0x58c   : > { %p19_p6 = scmp.ge.s32.totalorder %s22_s14, 4   ;;  %s1579_s10 = smov %s1252_s11 }
 0x58d   : > { %s1580_s11 = smov %s1386_s22  ;;  %s1581_s12 = smov %s1260_s13 }
 0x58e   : > { %s1582_s13 = smov %s1584_s17  ;;  %21 = sbr.rel (!%p19_p6) target bundleno = 6 (0x6), region = 116 }
 0x595   :  { %882 = vsyncpa [#allocation3], 1 }
 0x596   :  { %884 = vsyncpa [#allocation3 + $0x1], 1 }

</bundles_post_ra>
